<compile_context>
chip_gen: v5e
topology: v5e:2x2
jax: 0.10.0
libtpu: 0.0.40
codegen_flags: <defaults>
</compile_context>

<pallas_src>
import jax
import jax.numpy as jnp
from jax.experimental import pallas as pl
from jax.experimental.pallas import tpu as pltpu


def _round_up(a, m):
    return ((a + m - 1) // m) * m


def _leaky_relu(v, slope=0.2):
    return jnp.where(v >= 0, v, slope * v)


def _make_kernel(c, g, c_pad, g_pad, need_zero_init):
    """Build the fused kernel as a closure over the static channel geometry."""
    feat_offs = [c_pad + i * g_pad for i in range(4)]      # row slot of out_k
    in_rows = [c_pad + i * g_pad for i in range(5)]        # rows read by conv_k

    def kernel(x_ref, w1, w2, w3, w4, w5,
               b1, b2, b3, b4, b5, o_ref, buf_ref):
        w_refs = (w1, w2, w3, w4)
        b_refs = (b1, b2, b3, b4)

        if need_zero_init:
            # Padding rows feed zero weight columns; keep them finite (0) so
            # 0 * garbage can never produce NaN.
            buf_ref[...] = jnp.zeros_like(buf_ref)

        x = x_ref[...]                       # (c, TILE_HW): pixels on lanes
        buf_ref[0:c, :] = x

        for k in range(4):                   # conv1..conv4 + LeakyReLU
            acc = jnp.dot(w_refs[k][...], buf_ref[0:in_rows[k], :],
                          preferred_element_type=jnp.float32)
            acc = acc + b_refs[k][...]       # bias (g,1) broadcasts over lanes
            feat = _leaky_relu(acc).astype(buf_ref.dtype)
            buf_ref[feat_offs[k]:feat_offs[k] + g, :] = feat

        # conv5 (identity activation) + scaled residual, fused.
        out5 = jnp.dot(w5[...], buf_ref[0:in_rows[4], :],
                       preferred_element_type=jnp.float32) + b5[...]
        o_ref[...] = (out5 * 0.2 + x.astype(jnp.float32)).astype(o_ref.dtype)

    return kernel


def _pad_split_weight(wk, c, g, c_pad, g_pad, k):
    """Split conv_k weight per dense source and zero-pad each source's input
    channels to its 8-aligned slot width, then re-concatenate."""
    widths = [c] + [g] * (k - 1)
    pads = [c_pad - c] + [g_pad - g] * (k - 1)
    chunks, off = [], 0
    for width, p in zip(widths, pads):
        chunk = wk[:, off:off + width]
        off += width
        if p:
            chunk = jnp.pad(chunk, ((0, 0), (0, p)))
        chunks.append(chunk)
    return jnp.concatenate(chunks, axis=1)


def residual_dense_block(x_nchw, params, *, tile_hw_max=2048, io_dtype=None):
    """x_nchw: [N, C, H, W].  params: w{k}: (out_ch, in_ch), b{k}: (out_ch, 1)."""
    n, c, h, w = x_nchw.shape
    hw = h * w
    g = params["w1"].shape[0]                 # growths
    dtype = jnp.dtype(io_dtype) if io_dtype is not None else x_nchw.dtype

    c_pad = _round_up(c, 8)
    g_pad = _round_up(g, 8)
    need_zero_init = (c_pad != c) or (g_pad != g)

    # NCHW -> [N, C, H*W] is a pure reshape (no HBM transpose pass).
    x3 = x_nchw.reshape(n, c, hw).astype(dtype)

    # Lane-dense tiling along the pixel axis (multiple of 128).
    tile_hw = min(_round_up(tile_hw_max, 128), _round_up(hw, 128))
    hw_pad = _round_up(hw, tile_hw)
    if hw_pad != hw:
        # Padded tail columns are zeros -> finite results, sliced off below.
        x3 = jnp.pad(x3, ((0, 0), (0, 0), (0, hw_pad - hw)))

    weight_args, weight_specs = [], []
    for k in range(1, 6):
        wk_pad = _pad_split_weight(params[f"w{k}"].astype(dtype),
                                   c, g, c_pad, g_pad, k)
        weight_args.append(wk_pad)
        weight_specs.append(pl.BlockSpec(wk_pad.shape, lambda i, j: (0, 0)))

    bias_args, bias_specs = [], []
    for k in range(1, 6):
        bk = params[f"b{k}"].astype(jnp.float32)   # added to the f32 accumulator
        bias_args.append(bk)
        bias_specs.append(pl.BlockSpec(bk.shape, lambda i, j: (0, 0)))

    x_spec = pl.BlockSpec((None, c, tile_hw), lambda i, j: (i, 0, j))

    kernel = _make_kernel(c, g, c_pad, g_pad, need_zero_init)

    out3 = pl.pallas_call(
        kernel,
        out_shape=jax.ShapeDtypeStruct((n, c, hw_pad), dtype),
        grid_spec=pltpu.PrefetchScalarGridSpec(
            num_scalar_prefetch=0,
            grid=(n, hw_pad // tile_hw),
            in_specs=[x_spec] + weight_specs + bias_specs,
            out_specs=x_spec,
            scratch_shapes=[pltpu.VMEM((c_pad + 4 * g_pad, tile_hw), dtype)],
        ),
        compiler_params=pltpu.CompilerParams(
            dimension_semantics=("parallel", "parallel")),
    )(x3, *weight_args, *bias_args)

    out3 = out3[:, :, :hw]
    return out3.reshape(n, c, h, w).astype(x_nchw.dtype)


def init_params(key, channels, growths):
    """Synthetic weights matching nn.Conv2d(in, out, 1) shapes.
    w{k}: (out_ch, in_ch) (1x1 dims squeezed), b{k}: (out_ch, 1)."""
    params = {}
    in_chs = [channels + growths * i for i in range(5)]
    out_chs = [growths] * 4 + [channels]
    for i, (cin, cout) in enumerate(zip(in_chs, out_chs), start=1):
        key, kw, kb = jax.random.split(key, 3)
        bound = 1.0 / (cin ** 0.5)   # PyTorch Conv2d default init range
        params[f"w{i}"] = jax.random.uniform(kw, (cout, cin), jnp.float32,
                                             -bound, bound)
        params[f"b{i}"] = jax.random.uniform(kb, (cout, 1), jnp.float32,
                                             -bound, bound)
    return params


def reference(x, params):
    """Pure-JAX reference of the PyTorch forward (NCHW)."""
    def conv(inp, k):
        wk = params[f"w{k}"]               # (out, in)
        bk = params[f"b{k}"][:, 0]         # (out,)
        return jnp.einsum("oc,nchw->nohw", wk, inp) + bk[None, :, None, None]

    o1 = _leaky_relu(conv(x, 1))
    o2 = _leaky_relu(conv(jnp.concatenate([x, o1], 1), 2))
    o3 = _leaky_relu(conv(jnp.concatenate([x, o1, o2], 1), 3))
    o4 = _leaky_relu(conv(jnp.concatenate([x, o1, o2, o3], 1), 4))
    o5 = conv(jnp.concatenate([x, o1, o2, o3, o4], 1), 5)
    return o5 * 0.2 + x


if __name__ == "__main__":
    key = jax.random.PRNGKey(0)
    k_x, k_p, k_x2 = jax.random.split(key, 3)

    N, C, H, W = 2, 4, 16, 16
    G = 4
    x = jax.random.normal(k_x, (N, C, H, W), jnp.float32)
    params = init_params(k_p, C, G)

    out = jax.block_until_ready(residual_dense_block(x, params))
    ref = reference(x, params)
    assert out.shape == (N, C, H, W)
    assert jnp.allclose(out, ref, atol=1e-4, rtol=1e-4)

    # Non-128-multiple spatial size exercises the padded-tail path.
    x2 = jax.random.normal(k_x2, (1, C, 10, 10), jnp.float32)
    out2 = jax.block_until_ready(residual_dense_block(x2, params))
    ref2 = reference(x2, params)
    assert jnp.allclose(out2, ref2, atol=1e-4, rtol=1e-4)

    print("KERNEL_OK")
</pallas_src>

<mosaic_0001>
module attributes {stable_mosaic.version = 11 : i64} {
  func.func @kernel(%arg0: i32, %arg1: i32, %arg2: memref<1x4x256xf32, #tpu.memory_space<vmem>>, %arg3: memref<4x8xf32, #tpu.memory_space<vmem>>, %arg4: memref<4x16xf32, #tpu.memory_space<vmem>>, %arg5: memref<4x24xf32, #tpu.memory_space<vmem>>, %arg6: memref<4x32xf32, #tpu.memory_space<vmem>>, %arg7: memref<4x40xf32, #tpu.memory_space<vmem>>, %arg8: memref<4x1xf32, #tpu.memory_space<vmem>>, %arg9: memref<4x1xf32, #tpu.memory_space<vmem>>, %arg10: memref<4x1xf32, #tpu.memory_space<vmem>>, %arg11: memref<4x1xf32, #tpu.memory_space<vmem>>, %arg12: memref<4x1xf32, #tpu.memory_space<vmem>>, %arg13: memref<1x4x256xf32, #tpu.memory_space<vmem>>, %arg14: memref<40x256xf32, #tpu.memory_space<vmem>>) attributes {dimension_semantics = [#tpu.dimension_semantics<parallel>, #tpu.dimension_semantics<parallel>], iteration_bounds = array<i64: 2, 1>, scalar_prefetch = 0 : i64, scratch_operands = 1 : i64, tpu.core_type = #tpu.core_type<tc>, window_params = [{transform_indices = @transform_0, window_bounds = array<i64: 1, 4, 256>}, {pipeline_mode = #tpu.pipeline_mode<synchronous>, transform_indices = @transform_1, window_bounds = array<i64: 4, 8>}, {pipeline_mode = #tpu.pipeline_mode<synchronous>, transform_indices = @transform_2, window_bounds = array<i64: 4, 16>}, {pipeline_mode = #tpu.pipeline_mode<synchronous>, transform_indices = @transform_3, window_bounds = array<i64: 4, 24>}, {pipeline_mode = #tpu.pipeline_mode<synchronous>, transform_indices = @transform_4, window_bounds = array<i64: 4, 32>}, {pipeline_mode = #tpu.pipeline_mode<synchronous>, transform_indices = @transform_5, window_bounds = array<i64: 4, 40>}, {pipeline_mode = #tpu.pipeline_mode<synchronous>, transform_indices = @transform_6, window_bounds = array<i64: 4, 1>}, {pipeline_mode = #tpu.pipeline_mode<synchronous>, transform_indices = @transform_7, window_bounds = array<i64: 4, 1>}, {pipeline_mode = #tpu.pipeline_mode<synchronous>, transform_indices = @transform_8, window_bounds = array<i64: 4, 1>}, {pipeline_mode = #tpu.pipeline_mode<synchronous>, transform_indices = @transform_9, window_bounds = array<i64: 4, 1>}, {pipeline_mode = #tpu.pipeline_mode<synchronous>, transform_indices = @transform_10, window_bounds = array<i64: 4, 1>}, {transform_indices = @transform_11, window_bounds = array<i64: 1, 4, 256>}]} {
    %cst = arith.constant 0.000000e+00 : f32
    %0 = vector.broadcast %cst : f32 to vector<40x256xf32>
    %c0 = arith.constant 0 : index
    %c0_0 = arith.constant 0 : index
    %1 = vector.load %arg14[%c0, %c0_0] : memref<40x256xf32, #tpu.memory_space<vmem>>, vector<40x256xf32>
    tpu.vector_store %arg14[%c0, %c0_0], %0 {strides = array<i32>} : memref<40x256xf32, #tpu.memory_space<vmem>>, vector<40x256xf32>,
    %c0_1 = arith.constant 0 : index
    %c0_2 = arith.constant 0 : index
    %c0_3 = arith.constant 0 : index
    %2 = vector.load %arg2[%c0_1, %c0_2, %c0_3] : memref<1x4x256xf32, #tpu.memory_space<vmem>>, vector<1x4x256xf32>
    %3 = vector.shape_cast %2 : vector<1x4x256xf32> to vector<4x256xf32>
    %c0_4 = arith.constant 0 : index
    %c0_5 = arith.constant 0 : index
    %4 = vector.load %arg14[%c0_4, %c0_5] : memref<40x256xf32, #tpu.memory_space<vmem>>, vector<4x256xf32>
    tpu.vector_store %arg14[%c0_4, %c0_5], %3 {strides = array<i32>} : memref<40x256xf32, #tpu.memory_space<vmem>>, vector<4x256xf32>,
    %c0_6 = arith.constant 0 : index
    %c0_7 = arith.constant 0 : index
    %5 = vector.load %arg3[%c0_6, %c0_7] : memref<4x8xf32, #tpu.memory_space<vmem>>, vector<4x8xf32>
    %c0_8 = arith.constant 0 : index
    %c0_9 = arith.constant 0 : index
    %6 = vector.load %arg14[%c0_8, %c0_9] : memref<40x256xf32, #tpu.memory_space<vmem>>, vector<8x256xf32>
    %cst_10 = arith.constant dense<0.000000e+00> : vector<4x256xf32>
    %7 = tpu.matmul %5, %6, %cst_10 {dimension_numbers = #tpu.dot_dimension_numbers<[1], [0], [0], [1], [0, 0, 1, 1], [], []>} : vector<4x8xf32>, vector<8x256xf32>, vector<4x256xf32> -> vector<4x256xf32>
    %c0_11 = arith.constant 0 : index
    %c0_12 = arith.constant 0 : index
    %8 = vector.load %arg8[%c0_11, %c0_12] : memref<4x1xf32, #tpu.memory_space<vmem>>, vector<4x1xf32>
    %9 = vector.broadcast %8 : vector<4x1xf32> to vector<4x256xf32>
    %10 = arith.addf %7, %9 : vector<4x256xf32>
    %cst_13 = arith.constant 0.000000e+00 : f32
    %11 = vector.broadcast %cst_13 : f32 to vector<4x256xf32>
    %12 = arith.cmpf oge, %10, %11 : vector<4x256xf32>
    %cst_14 = arith.constant 2.000000e-01 : f32
    %13 = vector.broadcast %cst_14 : f32 to vector<4x256xf32>
    %14 = arith.mulf %13, %10 : vector<4x256xf32>
    %15 = arith.select %12, %10, %14 : vector<4x256xi1>, vector<4x256xf32>
    %c8 = arith.constant 8 : index
    %c0_15 = arith.constant 0 : index
    %16 = vector.load %arg14[%c8, %c0_15] : memref<40x256xf32, #tpu.memory_space<vmem>>, vector<4x256xf32>
    tpu.vector_store %arg14[%c8, %c0_15], %15 {strides = array<i32>} : memref<40x256xf32, #tpu.memory_space<vmem>>, vector<4x256xf32>,
    %c0_16 = arith.constant 0 : index
    %c0_17 = arith.constant 0 : index
    %17 = vector.load %arg4[%c0_16, %c0_17] : memref<4x16xf32, #tpu.memory_space<vmem>>, vector<4x16xf32>
    %c0_18 = arith.constant 0 : index
    %c0_19 = arith.constant 0 : index
    %18 = vector.load %arg14[%c0_18, %c0_19] : memref<40x256xf32, #tpu.memory_space<vmem>>, vector<16x256xf32>
    %cst_20 = arith.constant dense<0.000000e+00> : vector<4x256xf32>
    %19 = tpu.matmul %17, %18, %cst_20 {dimension_numbers = #tpu.dot_dimension_numbers<[1], [0], [0], [1], [0, 0, 1, 1], [], []>} : vector<4x16xf32>, vector<16x256xf32>, vector<4x256xf32> -> vector<4x256xf32>
    %c0_21 = arith.constant 0 : index
    %c0_22 = arith.constant 0 : index
    %20 = vector.load %arg9[%c0_21, %c0_22] : memref<4x1xf32, #tpu.memory_space<vmem>>, vector<4x1xf32>
    %21 = vector.broadcast %20 : vector<4x1xf32> to vector<4x256xf32>
    %22 = arith.addf %19, %21 : vector<4x256xf32>
    %cst_23 = arith.constant 0.000000e+00 : f32
    %23 = vector.broadcast %cst_23 : f32 to vector<4x256xf32>
    %24 = arith.cmpf oge, %22, %23 : vector<4x256xf32>
    %cst_24 = arith.constant 2.000000e-01 : f32
    %25 = vector.broadcast %cst_24 : f32 to vector<4x256xf32>
    %26 = arith.mulf %25, %22 : vector<4x256xf32>
    %27 = arith.select %24, %22, %26 : vector<4x256xi1>, vector<4x256xf32>
    %c16 = arith.constant 16 : index
    %c0_25 = arith.constant 0 : index
    %28 = vector.load %arg14[%c16, %c0_25] : memref<40x256xf32, #tpu.memory_space<vmem>>, vector<4x256xf32>
    tpu.vector_store %arg14[%c16, %c0_25], %27 {strides = array<i32>} : memref<40x256xf32, #tpu.memory_space<vmem>>, vector<4x256xf32>,
    %c0_26 = arith.constant 0 : index
    %c0_27 = arith.constant 0 : index
    %29 = vector.load %arg5[%c0_26, %c0_27] : memref<4x24xf32, #tpu.memory_space<vmem>>, vector<4x24xf32>
    %c0_28 = arith.constant 0 : index
    %c0_29 = arith.constant 0 : index
    %30 = vector.load %arg14[%c0_28, %c0_29] : memref<40x256xf32, #tpu.memory_space<vmem>>, vector<24x256xf32>
    %cst_30 = arith.constant dense<0.000000e+00> : vector<4x256xf32>
    %31 = tpu.matmul %29, %30, %cst_30 {dimension_numbers = #tpu.dot_dimension_numbers<[1], [0], [0], [1], [0, 0, 1, 1], [], []>} : vector<4x24xf32>, vector<24x256xf32>, vector<4x256xf32> -> vector<4x256xf32>
    %c0_31 = arith.constant 0 : index
    %c0_32 = arith.constant 0 : index
    %32 = vector.load %arg10[%c0_31, %c0_32] : memref<4x1xf32, #tpu.memory_space<vmem>>, vector<4x1xf32>
    %33 = vector.broadcast %32 : vector<4x1xf32> to vector<4x256xf32>
    %34 = arith.addf %31, %33 : vector<4x256xf32>
    %cst_33 = arith.constant 0.000000e+00 : f32
    %35 = vector.broadcast %cst_33 : f32 to vector<4x256xf32>
    %36 = arith.cmpf oge, %34, %35 : vector<4x256xf32>
    %cst_34 = arith.constant 2.000000e-01 : f32
    %37 = vector.broadcast %cst_34 : f32 to vector<4x256xf32>
    %38 = arith.mulf %37, %34 : vector<4x256xf32>
    %39 = arith.select %36, %34, %38 : vector<4x256xi1>, vector<4x256xf32>
    %c24 = arith.constant 24 : index
    %c0_35 = arith.constant 0 : index
    %40 = vector.load %arg14[%c24, %c0_35] : memref<40x256xf32, #tpu.memory_space<vmem>>, vector<4x256xf32>
    tpu.vector_store %arg14[%c24, %c0_35], %39 {strides = array<i32>} : memref<40x256xf32, #tpu.memory_space<vmem>>, vector<4x256xf32>,
    %c0_36 = arith.constant 0 : index
    %c0_37 = arith.constant 0 : index
    %41 = vector.load %arg6[%c0_36, %c0_37] : memref<4x32xf32, #tpu.memory_space<vmem>>, vector<4x32xf32>
    %c0_38 = arith.constant 0 : index
    %c0_39 = arith.constant 0 : index
    %42 = vector.load %arg14[%c0_38, %c0_39] : memref<40x256xf32, #tpu.memory_space<vmem>>, vector<32x256xf32>
    %cst_40 = arith.constant dense<0.000000e+00> : vector<4x256xf32>
    %43 = tpu.matmul %41, %42, %cst_40 {dimension_numbers = #tpu.dot_dimension_numbers<[1], [0], [0], [1], [0, 0, 1, 1], [], []>} : vector<4x32xf32>, vector<32x256xf32>, vector<4x256xf32> -> vector<4x256xf32>
    %c0_41 = arith.constant 0 : index
    %c0_42 = arith.constant 0 : index
    %44 = vector.load %arg11[%c0_41, %c0_42] : memref<4x1xf32, #tpu.memory_space<vmem>>, vector<4x1xf32>
    %45 = vector.broadcast %44 : vector<4x1xf32> to vector<4x256xf32>
    %46 = arith.addf %43, %45 : vector<4x256xf32>
    %cst_43 = arith.constant 0.000000e+00 : f32
    %47 = vector.broadcast %cst_43 : f32 to vector<4x256xf32>
    %48 = arith.cmpf oge, %46, %47 : vector<4x256xf32>
    %cst_44 = arith.constant 2.000000e-01 : f32
    %49 = vector.broadcast %cst_44 : f32 to vector<4x256xf32>
    %50 = arith.mulf %49, %46 : vector<4x256xf32>
    %51 = arith.select %48, %46, %50 : vector<4x256xi1>, vector<4x256xf32>
    %c32 = arith.constant 32 : index
    %c0_45 = arith.constant 0 : index
    %52 = vector.load %arg14[%c32, %c0_45] : memref<40x256xf32, #tpu.memory_space<vmem>>, vector<4x256xf32>
    tpu.vector_store %arg14[%c32, %c0_45], %51 {strides = array<i32>} : memref<40x256xf32, #tpu.memory_space<vmem>>, vector<4x256xf32>,
    %c0_46 = arith.constant 0 : index
    %c0_47 = arith.constant 0 : index
    %53 = vector.load %arg7[%c0_46, %c0_47] : memref<4x40xf32, #tpu.memory_space<vmem>>, vector<4x40xf32>
    %c0_48 = arith.constant 0 : index
    %c0_49 = arith.constant 0 : index
    %54 = vector.load %arg14[%c0_48, %c0_49] : memref<40x256xf32, #tpu.memory_space<vmem>>, vector<40x256xf32>
    %cst_50 = arith.constant dense<0.000000e+00> : vector<4x256xf32>
    %55 = tpu.matmul %53, %54, %cst_50 {dimension_numbers = #tpu.dot_dimension_numbers<[1], [0], [0], [1], [0, 0, 1, 1], [], []>} : vector<4x40xf32>, vector<40x256xf32>, vector<4x256xf32> -> vector<4x256xf32>
    %c0_51 = arith.constant 0 : index
    %c0_52 = arith.constant 0 : index
    %56 = vector.load %arg12[%c0_51, %c0_52] : memref<4x1xf32, #tpu.memory_space<vmem>>, vector<4x1xf32>
    %57 = vector.broadcast %56 : vector<4x1xf32> to vector<4x256xf32>
    %58 = arith.addf %55, %57 : vector<4x256xf32>
    %cst_53 = arith.constant 2.000000e-01 : f32
    %59 = vector.broadcast %cst_53 : f32 to vector<4x256xf32>
    %60 = arith.mulf %58, %59 : vector<4x256xf32>
    %61 = arith.addf %60, %3 : vector<4x256xf32>
    %c0_54 = arith.constant 0 : index
    %c0_55 = arith.constant 0 : index
    %c0_56 = arith.constant 0 : index
    %62 = vector.load %arg13[%c0_54, %c0_55, %c0_56] : memref<1x4x256xf32, #tpu.memory_space<vmem>>, vector<1x4x256xf32>
    %63 = vector.shape_cast %62 : vector<1x4x256xf32> to vector<4x256xf32>
    %64 = vector.shape_cast %61 : vector<4x256xf32> to vector<1x4x256xf32>
    tpu.vector_store %arg13[%c0_54, %c0_55, %c0_56], %64 {strides = array<i32>} : memref<1x4x256xf32, #tpu.memory_space<vmem>>, vector<1x4x256xf32>,
    return
  }
  func.func @transform_0(%arg0: i32, %arg1: i32) -> (i32, i32, i32) {
    %c0_i32 = arith.constant 0 : i32
    %c0_i32_0 = arith.constant 0 : i32
    return %arg0, %c0_i32, %arg1 : i32, i32, i32
  }
  func.func @transform_1(%arg0: i32, %arg1: i32) -> (i32, i32) {
    %c0_i32 = arith.constant 0 : i32
    %c0_i32_0 = arith.constant 0 : i32
    %c0_i32_1 = arith.constant 0 : i32
    return %c0_i32, %c0_i32_0 : i32, i32
  }
  func.func @transform_2(%arg0: i32, %arg1: i32) -> (i32, i32) {
    %c0_i32 = arith.constant 0 : i32
    %c0_i32_0 = arith.constant 0 : i32
    %c0_i32_1 = arith.constant 0 : i32
    return %c0_i32, %c0_i32_0 : i32, i32
  }
  func.func @transform_3(%arg0: i32, %arg1: i32) -> (i32, i32) {
    %c0_i32 = arith.constant 0 : i32
    %c0_i32_0 = arith.constant 0 : i32
    %c0_i32_1 = arith.constant 0 : i32
    return %c0_i32, %c0_i32_0 : i32, i32
  }
  func.func @transform_4(%arg0: i32, %arg1: i32) -> (i32, i32) {
    %c0_i32 = arith.constant 0 : i32
    %c0_i32_0 = arith.constant 0 : i32
    %c0_i32_1 = arith.constant 0 : i32
    return %c0_i32, %c0_i32_0 : i32, i32
  }
  func.func @transform_5(%arg0: i32, %arg1: i32) -> (i32, i32) {
    %c0_i32 = arith.constant 0 : i32
    %c0_i32_0 = arith.constant 0 : i32
    %c0_i32_1 = arith.constant 0 : i32
    return %c0_i32, %c0_i32_0 : i32, i32
  }
  func.func @transform_6(%arg0: i32, %arg1: i32) -> (i32, i32) {
    %c0_i32 = arith.constant 0 : i32
    %c0_i32_0 = arith.constant 0 : i32
    %c0_i32_1 = arith.constant 0 : i32
    return %c0_i32, %c0_i32_0 : i32, i32
  }
  func.func @transform_7(%arg0: i32, %arg1: i32) -> (i32, i32) {
    %c0_i32 = arith.constant 0 : i32
    %c0_i32_0 = arith.constant 0 : i32
    %c0_i32_1 = arith.constant 0 : i32
    return %c0_i32, %c0_i32_0 : i32, i32
  }
  func.func @transform_8(%arg0: i32, %arg1: i32) -> (i32, i32) {
    %c0_i32 = arith.constant 0 : i32
    %c0_i32_0 = arith.constant 0 : i32
    %c0_i32_1 = arith.constant 0 : i32
    return %c0_i32, %c0_i32_0 : i32, i32
  }
  func.func @transform_9(%arg0: i32, %arg1: i32) -> (i32, i32) {
    %c0_i32 = arith.constant 0 : i32
    %c0_i32_0 = arith.constant 0 : i32
    %c0_i32_1 = arith.constant 0 : i32
    return %c0_i32, %c0_i32_0 : i32, i32
  }
  func.func @transform_10(%arg0: i32, %arg1: i32) -> (i32, i32) {
    %c0_i32 = arith.constant 0 : i32
    %c0_i32_0 = arith.constant 0 : i32
    %c0_i32_1 = arith.constant 0 : i32
    return %c0_i32, %c0_i32_0 : i32, i32
  }
  func.func @transform_11(%arg0: i32, %arg1: i32) -> (i32, i32, i32) {
    %c0_i32 = arith.constant 0 : i32
    %c0_i32_0 = arith.constant 0 : i32
    return %arg0, %c0_i32, %arg1 : i32, i32, i32
  }
}

</mosaic_0001>

<bundles_post_ra>
// kernel: tpu_custom_call.1
= control target key start
LH: loop header
LB: loop body
LE: loop exit
PB: predicated region body
PF: predicated region fallthrough
CT: control target
= control target key end

     0   :  { %s1330_s0 = inlined_call_operand.hbm [shape: f32[2,4,256], index: 0, kind: input, shape index: {}]   ;;  %s1331_s1 = inlined_call_operand.vmem [shape: f32[4,8], index: 1, kind: input, shape index: {}]   ;;  %s1332_s2 = inlined_call_operand.vmem [shape: f32[4,16], index: 2, kind: input, shape index: {}]   ;;  %s1333_s3 = inlined_call_operand.vmem [shape: f32[4,24], index: 3, kind: input, shape index: {}]   ;;  %s1334_s4 = inlined_call_operand.vmem [shape: f32[4,32], index: 4, kind: input, shape index: {}]   ;;  %s1335_s5 = inlined_call_operand.vmem [shape: f32[4,40], index: 5, kind: input, shape index: {}]   ;;  %s1336_s6 = inlined_call_operand.vmem [shape: f32[4,1], index: 6, kind: input, shape index: {}]   ;;  %s1337_s7 = inlined_call_operand.vmem [shape: f32[4,1], index: 7, kind: input, shape index: {}]   ;;  %s1338_s8 = inlined_call_operand.vmem [shape: f32[4,1], index: 8, kind: input, shape index: {}]   ;;  %s1339_s9 = inlined_call_operand.vmem [shape: f32[4,1], index: 9, kind: input, shape index: {}]   ;;  %s1340_s10 = inlined_call_operand.vmem [shape: f32[4,1], index: 10, kind: input, shape index: {}]   ;;  %s1341_s11 = inlined_call_operand.hbm [shape: f32[2,4,256], index: 11, kind: output, shape index: {}]  }
   0x1   :  { %1347 = sst [smem:[#allocation12_spill]] %s1341_s11 }
   0x2   :  { %16 = vsyncpa [#allocation4], 0 }
   0x3   :  { %18 = vsyncpa [#allocation4 + $0x1], 0 }
   0x4   :  { %19 = vsyncpa [#allocation5], 0 }
   0x5   :  { %21 = vsyncpa [#allocation5 + $0x1], 0  ;;  %s1150_s17 = smov 0   ;;  %s1152_s18 = smov 0  }
   0x6   :  { %s1154_s19 = smov 0   ;;  %s1156_s20 = smov 0  }
   0x7   :  { %s1158_s21 = smov 0   ;;  %s1160_s22 = smov 0  }
   0x8 LB: > { %1348 = sst [smem:[#allocation9_spill]] %s1066_s17  ;;  %s880_s23 = sadd.s32 4294967295, %s1086_s22   ;;  %s1086_s22 = sphi %s1160_s22, %s27_s22   ;;  %s1082_s21 = sphi %s1158_s21, %s1363_s21   ;;  %s1078_s20 = sphi %s1156_s20, %s1362_s20   ;;  %s1074_s19 = sphi %s1154_s19, %s1361_s19   ;;  %s1070_s18 = sphi %s1152_s18, %s1360_s18   ;;  %s1066_s17 = sphi %s1150_s17, %s1359_s17  }
   0x9   : > { %s881_s24 = sadd.s32 4294967294, %s1086_s22   ;;  %s39_s25 = sadd.s32 1, %s1082_s21 }
   0xa   : > { %s48_s26 = sadd.s32 1, %s1074_s19  ;;  %p41_p0 = scmp.ge.s32.totalorder %s39_s25, 2 }
   0xb   : > { %p55_p1 = scmp.ne.s32.totalorder %s1074_s19, %s1070_s18  ;;  %p56_p2 = scmp.eq.s32.totalorder %s1086_s22, 0 }
   0xc   : > { %p61_p3 = scmp.ne.s32.totalorder %s1070_s18, %s1066_s17  ;;  %s1365_s25 = smov (%p41_p0, %s39_s25), 0 }
   0xd   : > { %1349 = sst [smem:[#allocation10_spill]] %s1365_s25  ;;  %p1191_p4 = por %p56_p2, %p55_p1 }
   0xe   : > { %p62_p5 = scmp.eq.s32.totalorder %s880_s23, 0  ;;  %s43_s28 = ssub.s32 %s1082_s21, %s1365_s25 }
   0xf   : > { %p297_p6 = scmp.eq.s32.totalorder %s880_s23, 1  ;;  %p46_p7 = scmp.eq.s32.totalorder %s43_s28, 0 }
  0x10   : > { %p1197_p8 = por %p62_p5, %p61_p3  ;;  %p303_p10 = scmp.eq.s32.totalorder %s881_s24, 1 }
  0x11   : > { %p1201_p9 = por %p297_p6, %p55_p1  ;;  %p883_p12 = scmp.ge.s32.totalorder %s1086_s22, 2 }
  0x12   : > { %s1206_s12 = scalar_select %p46_p7, %s1074_s19, %s48_s26  }
  0x13   : > { %s1352_s30 = scalar_select %p1201_p9, 1, 0 }
  0x14   : > { %p1208_p11 = por %p303_p10, %p61_p3  ;;  %p919_p13 = scmp.lt.s32.totalorder %s1086_s22, 2 }
  0x15   : > { %1353 = sst [smem:[#allocation11_spill]] %s1352_s30  ;;  %s353_s14 = sand.u32 1, %s1074_s19  }
  0x16   : > { %s884_s15 = sshll.u32 %s353_s14, 3  ;;  %s905_s16 = sshll.u32 %s1082_s21, 3 }
  0x17   : > { %s364_s25 = scalar_lea.hbm %s1330_s0, %s905_s16  ;;  %s357_s17 = scalar_lea.vmem [#allocation3], %s884_s15 }
  0x18   : > { %s368_s30 = sshll.u32 %s357_s17, 4  ;;  %s366_s11 = sshll.u32 %s364_s25, 4  ;;  %s369_s30 = int_to_ptr.vmem [resolvable:$true] %s368_s30  ;;  %s367_s11 = int_to_ptr.hbm [resolvable:$true] %s366_s11 }
  0x19   : > { %p912_p0 = pnand %p919_p13, %p1191_p4  ;;  %p887_p1 = scmp.ge.s32.totalorder %s1086_s22, 1 }
  0x1a   : > { %p373_p2 = scmp.lt.s32.totalorder %s1086_s22, 3  ;;  %s354_s24 = scalar_lea.sflag [#allocation4], %s353_s14 }
  0x1b   : > { %914 = dma.hbm_to_vmem [thread:$0]  (!%p912_p0), %s367_s11, 128, %s369_s30, %s354_s24  }
  0x1c   : > { %p374_p3 = pnand %p887_p1, %p373_p2 }
  0x1d   : > { %s1224_s26 = sand.u32 (!%p374_p3), 1, %s1070_s18  }
  0x1e   : > { %377 = sbr.rel (%p374_p3) target bundleno = 798 (0x31e), region = 64  ;;  %s888_s15 = sshll.u32 (!%p374_p3), %s1224_s26, 3 }
  0x1f   : > { %s380_s17 = scalar_lea.sflag (!%p374_p3), [#allocation4], %s1224_s26  ;;  %s383_s25 = scalar_lea.vmem (!%p374_p3), [#allocation3], %s888_s15 }
  0x23   : > { %1057 = dma.done.wait (%p1197_p8), %s380_s17, 128  }
  0x24   : > { %1059 = vsyncadd (%p1197_p8), %s380_s17, 4294967168  ;;  %v1088_v0 = vmov 0.0   ;;  %v1089_v1 = vmov 0   ;;  %v435_v2 = vld [vmem:[%s383_s25] sm:$0xff]  ;;  %vm453_vm0 = vcmask 64512   ;;  %vm516_vm3 = vcmask 130048  }
  0x25   : > { %425 = vst [vmem:[#allocation2 + $0x30] sm:$0xff] %v1088_v0  ;;  %971 = vset.pattern.permute.xlu0 %v1089_v1  ;;  %972 = vset.pattern.permute.xlu1 %v1089_v1  ;;  %v447_v3 = vld [vmem:[%s1336_s6] sm:$0xf]  ;;  %vm581_vm6 = vcmask 195584   ;;  %vm648_vm9 = vcmask 261120   ;;  %vm717_vm12 = vcmask 326656  }
  0x26   : > { %426 = vst [vmem:[#allocation2] sm:$0xff] %v1088_v0  ;;  %973 = vset.pattern.permute.xlu2 %v1089_v1  ;;  %450 = vperm.xlu0 %971, %v447_v3   ;;  %v510_v4 = vld [vmem:[%s1337_s7] sm:$0xf]  ;;  %s906_s17 = sshll.u32 %s1078_s20, 3  ;;  %s1355_s27 = sld [smem:[#allocation12_spill]]  ;;  %vm773_vm13 = vcmask 1043456  }
  0x27   : > { %427 = vst [vmem:[#allocation2 + $0x18] sm:$0xff] %v1088_v0  ;;  %v444_v7 = vld [vmem:[%s1331_s1] sm:$0xf]  ;;  %s422_s14 = scalar_lea.vmem [#allocation6], %s888_s15  ;;  %s778_s20 = scalar_lea.sflag [#allocation5], %s1224_s26 }
  0x28   : > { %428 = vst [vmem:[#allocation2 + $0x10] sm:$0xff] %v1088_v0  ;;  %v505_v21 = vld [vmem:[%s1332_s2] sm:$0xf]  ;;  %s793_s16 = sshll.u32 %s422_s14, 4  ;;  %s794_s16 = int_to_ptr.vmem [resolvable:$true] %s793_s16 }
  0x29   : > { %429 = vst [vmem:[#allocation2 + $0x48] sm:$0xff] %v1088_v0  ;;  %v575_v22 = vld [vmem:[%s1338_s8] sm:$0xf] }
  0x2a   : > { %430 = vst [vmem:[#allocation2 + $0x28] sm:$0xff] %v1088_v0  ;;  %578 = vperm.xlu1 %972, %v575_v22   ;;  %v642_v23 = vld [vmem:[%s1339_s9] sm:$0xf] }
  0x2b   : > { %431 = vst [vmem:[#allocation2 + $0x8] sm:$0xff] %v1088_v0  ;;  %v568_v35 = vld [vmem:[%s1333_s3] sm:$0xf] }
  0x2c   : > { %437 = vst [vmem:[#allocation1] ss:$2 sm:$0xff] %v435_v2  ;;  %v633_v47 = vld [vmem:[%s1334_s4] sm:$0xf]  ;;  %s791_s29 = scalar_lea.hbm %s1355_s27, %s906_s17  ;;  %s1024_s15 = scalar_lea.hbm %s1355_s27, 16 }
  0x2d   : > { %432 = vst [vmem:[#allocation2 + $0x20] sm:$0xff] %v1088_v0  ;;  %v711_v48 = vld [vmem:[%s1340_s10] sm:$0xf]  ;;  %s795_s23 = sshll.u32 %s791_s29, 4  ;;  %s796_s23 = int_to_ptr.hbm [resolvable:$true] %s795_s23 }
  0x2e   : > { %433 = vst [vmem:[#allocation2 + $0x40] sm:$0xff] %v1088_v0  ;;  %513 = vperm.xlu0 %971, %v510_v4   ;;  %714 = vperm.xlu2 %973, %v711_v48   ;;  %v700_v60 = vld [vmem:[%s1335_s5] sm:$0xf]  ;;  %s1018_s28 = sshra.s32 %s796_s23, 4  ;;  %s1019_s28 = int_to_ptr.hbm [resolvable:$true] %s1018_s28 }
  0x2f   : > { %434 = vst [vmem:[#allocation2 + $0x38] sm:$0xff] %v1088_v0  ;;  %s1020_s24 = scalar_lea.hbm %s1019_s28, 8  ;;  %p1025_p7 = scmp.lt.s32.totalorder %s1019_s28, %s1355_s27 }
  0x30   : > { %p1021_p4 = scmp.ne.s32.totalorder %s1019_s28, %s1020_s24  ;;  %p1026_p8 = scmp.lt.s32.totalorder %s1024_s15, %s1020_s24 }
  0x32   : > { %645 = vperm.xlu1 %972, %v642_v23   ;;  %p1022_p5 = pnand %p1021_p4, %p1201_p9  ;;  %p1027_p10 = por %p1026_p8, %p1025_p7 }
  0x33   : > { %v438_v5 = vld.sshfl [vmem:[#allocation1] sm:$0xff pattern:$0x75316420]  ;;  %v439_v6 = vld.sshfl [vmem:[#allocation1 + $0x8] sm:$0xff pattern:$0x75316420] }
  0x34   : > { %442 = vst [vmem:[#allocation2 + $0x30] sm:$0xf] %v438_v5  ;;  %p1023_p6 = pneg %p1022_p5 }
  0x35   : > { %443 = vst [vmem:[#allocation2] sm:$0xf] %v439_v6 }
  0x36   : > { %763 = vst [vmem:[#allocation1] ss:$2 sm:$0xff] %v435_v2  ;;  %p1028_p13 = pnand %p1027_p10, %p1023_p6 }
  0x3b   : > { %v1243_v8 = vld [vmem:[#allocation2 + $0x30] sm:$0xff] }
  0x3c   : > { %472 = vmatpush.msra.mxu2 %v1243_v8  ;;  %v1246_v9 = vld [vmem:[#allocation2] sm:$0xff] }
  0x3d   : > { %492 = vmatpush.msra.mxu3 %v1246_v9  ;;  %890 = vmatmul.msk.f32.vlgmr.msra.gmra.mxu2 %vm453_vm0, %v444_v7  ;;  %v765_v2 = vld.sshfl [vmem:[#allocation1 + $0x8] sm:$0xff pattern:$0x75316420]  ;;  %v764_v5 = vld.sshfl [vmem:[#allocation1] sm:$0xff pattern:$0x75316420] }
  0x3e   : > { %891 = vmatmul.msk.f32.vlgmr.msra.gmra.mxu3 %vm453_vm0, %v444_v7 }
  0x88   : > { %v715_v61 = vpop.permute.xlu2 %714 }
  0x98   : > { %v451_v10 = vpop.permute.xlu0 %450 }
  0x9c   : > { %v579_v36 = vpop.permute.xlu1 %578 }
  0xa0   : > { %v514_v24 = vpop.permute.xlu0 %513 }
  0xa4   : > { %v646_v49 = vpop.permute.xlu1 %645 }
  0xc0   : > { %v474_v11 = vpop.f32.mrf.mxu2 }
  0xc1   : > { %v475_v12 = vadd.f32 %v474_v11, %v451_v10  ;;  %v494_v13 = vpop.f32.mrf.mxu3 }
  0xc2   : > { %v495_v14 = vadd.f32 %v494_v13, %v451_v10 }
  0xc3   : > { %vm497_vm1 = vcmp.ge.f32.partialorder %v475_v12, 0.0  ;;  %v499_v15 = vmul.f32 0.2, %v475_v12 }
  0xc4   : > { %vm498_vm2 = vcmp.ge.f32.partialorder %v495_v14, 0.0  ;;  %v500_v16 = vmul.f32 0.2, %v495_v14 }
  0xc5   : > { %v501_v17 = vsel %vm497_vm1, %v475_v12, %v499_v15 }
  0xc6   : > { %503 = vst [vmem:[#allocation2 + $0x18] sm:$0xf] %v501_v17  ;;  %v502_v18 = vsel %vm498_vm2, %v495_v14, %v500_v16 }
  0xc7   : > { %504 = vst [vmem:[#allocation2 + $0x10] sm:$0xf] %v502_v18 }
  0xcd   : > { %v1249_v19 = vld [vmem:[#allocation2 + $0x18] sm:$0xff] }
  0xce   : > { %534 = vmatpush.msrb.mxu2 %v1249_v19  ;;  %v1252_v20 = vld [vmem:[#allocation2 + $0x10] sm:$0xff] }
  0xcf   : > { %554 = vmatpush.msrb.mxu3 %v1252_v20 }
  0xd0   : > { %535 = vmatpush.msrb.mxu2 %v1243_v8 }
  0xd1   : > { %555 = vmatpush.msrb.mxu3 %v1246_v9  ;;  %892 = vmatmul.msk.f32.vlgmr.msrb.gmra.mxu2 %vm516_vm3, %v505_v21 }
  0xd2   : > { %893 = vmatmul.msk.f32.vlgmr.msrb.gmra.mxu3 %vm516_vm3, %v505_v21 }
 0x154   : > { %v537_v25 = vpop.f32.mrf.mxu2 }
 0x155   : > { %v538_v26 = vadd.f32 %v537_v25, %v514_v24  ;;  %v557_v27 = vpop.f32.mrf.mxu3 }
 0x156   : > { %v558_v28 = vadd.f32 %v557_v27, %v514_v24 }
 0x157   : > { %vm560_vm4 = vcmp.ge.f32.partialorder %v538_v26, 0.0  ;;  %v562_v29 = vmul.f32 0.2, %v538_v26 }
 0x158   : > { %vm561_vm5 = vcmp.ge.f32.partialorder %v558_v28, 0.0  ;;  %v563_v30 = vmul.f32 0.2, %v558_v28 }
 0x159   : > { %v564_v31 = vsel %vm560_vm4, %v538_v26, %v562_v29 }
 0x15a   : > { %566 = vst [vmem:[#allocation2 + $0x48] sm:$0xf] %v564_v31  ;;  %v565_v32 = vsel %vm561_vm5, %v558_v28, %v563_v30 }
 0x15b   : > { %567 = vst [vmem:[#allocation2 + $0x28] sm:$0xf] %v565_v32 }
 0x161   : > { %v573_v33 = vld [vmem:[#allocation2 + $0x48] sm:$0xff] }
 0x162   : > { %598 = vmatpush.msra.mxu0 %v573_v33  ;;  %v574_v34 = vld [vmem:[#allocation2 + $0x28] sm:$0xff] }
 0x163   : > { %618 = vmatpush.msra.mxu1 %v574_v34 }
 0x164   : > { %599 = vmatpush.msra.mxu0 %v1249_v19 }
 0x165   : > { %619 = vmatpush.msra.mxu1 %v1252_v20 }
 0x166   : > { %600 = vmatpush.msra.mxu0 %v1243_v8 }
 0x167   : > { %620 = vmatpush.msra.mxu1 %v1246_v9  ;;  %894 = vmatmul.msk.f32.vlgmr.msra.gmra.mxu0 %vm581_vm6, %v568_v35 }
 0x168   : > { %895 = vmatmul.msk.f32.vlgmr.msra.gmra.mxu1 %vm581_vm6, %v568_v35 }
 0x1e4   : > { %v602_v37 = vpop.f32.mrf.mxu0 }
 0x1e5   : > { %v603_v38 = vadd.f32 %v602_v37, %v579_v36  ;;  %v622_v39 = vpop.f32.mrf.mxu1 }
 0x1e6   : > { %v623_v40 = vadd.f32 %v622_v39, %v579_v36 }
 0x1e7   : > { %vm625_vm7 = vcmp.ge.f32.partialorder %v603_v38, 0.0  ;;  %v627_v41 = vmul.f32 0.2, %v603_v38 }
 0x1e8   : > { %vm626_vm8 = vcmp.ge.f32.partialorder %v623_v40, 0.0  ;;  %v628_v42 = vmul.f32 0.2, %v623_v40 }
 0x1e9   : > { %v629_v43 = vsel %vm625_vm7, %v603_v38, %v627_v41 }
 0x1ea   : > { %631 = vst [vmem:[#allocation2 + $0x8] sm:$0xf] %v629_v43  ;;  %v630_v44 = vsel %vm626_vm8, %v623_v40, %v628_v42 }
 0x1eb   : > { %632 = vst [vmem:[#allocation2 + $0x20] sm:$0xf] %v630_v44 }
 0x1f1   : > { %v640_v45 = vld [vmem:[#allocation2 + $0x8] sm:$0xff] }
 0x1f2   : > { %664 = vmatpush.msra.mxu2 %v640_v45  ;;  %v641_v46 = vld [vmem:[#allocation2 + $0x20] sm:$0xff] }
 0x1f3   : > { %684 = vmatpush.msra.mxu3 %v641_v46 }
 0x1f4   : > { %665 = vmatpush.msra.mxu2 %v573_v33 }
 0x1f5   : > { %685 = vmatpush.msra.mxu3 %v574_v34 }
 0x1f6   : > { %666 = vmatpush.msra.mxu2 %v1249_v19 }
 0x1f7   : > { %686 = vmatpush.msra.mxu3 %v1252_v20 }
 0x1f8   : > { %667 = vmatpush.msra.mxu2 %v1243_v8 }
 0x1f9   : > { %687 = vmatpush.msra.mxu3 %v1246_v9  ;;  %896 = vmatmul.msk.f32.vlgmr.msra.gmra.mxu2 %vm648_vm9, %v633_v47 }
 0x1fa   : > { %897 = vmatmul.msk.f32.vlgmr.msra.gmra.mxu3 %vm648_vm9, %v633_v47 }
 0x27c   : > { %v669_v50 = vpop.f32.mrf.mxu2 }
 0x27d   : > { %v670_v51 = vadd.f32 %v669_v50, %v646_v49  ;;  %v689_v52 = vpop.f32.mrf.mxu3 }
 0x27e   : > { %v690_v53 = vadd.f32 %v689_v52, %v646_v49 }
 0x27f   : > { %vm692_vm10 = vcmp.ge.f32.partialorder %v670_v51, 0.0  ;;  %v694_v54 = vmul.f32 0.2, %v670_v51 }
 0x280   : > { %vm693_vm11 = vcmp.ge.f32.partialorder %v690_v53, 0.0  ;;  %v695_v55 = vmul.f32 0.2, %v690_v53 }
 0x281   : > { %v696_v56 = vsel %vm692_vm10, %v670_v51, %v694_v54 }
 0x282   : > { %698 = vst [vmem:[#allocation2 + $0x40] sm:$0xf] %v696_v56  ;;  %v697_v57 = vsel %vm693_vm11, %v690_v53, %v695_v55 }
 0x283   : > { %699 = vst [vmem:[#allocation2 + $0x38] sm:$0xf] %v697_v57 }
 0x289   : > { %v709_v58 = vld [vmem:[#allocation2 + $0x40] sm:$0xff] }
 0x28a   : > { %732 = vmatpush.msrb.mxu0 %v709_v58  ;;  %v710_v59 = vld [vmem:[#allocation2 + $0x38] sm:$0xff] }
 0x28b   : > { %752 = vmatpush.msrb.mxu1 %v710_v59 }
 0x28c   : > { %733 = vmatpush.msrb.mxu0 %v640_v45 }
 0x28d   : > { %753 = vmatpush.msrb.mxu1 %v641_v46 }
 0x28e   : > { %734 = vmatpush.msrb.mxu0 %v573_v33 }
 0x28f   : > { %754 = vmatpush.msrb.mxu1 %v574_v34 }
 0x290   : > { %735 = vmatpush.msrb.mxu0 %v1249_v19 }
 0x291   : > { %755 = vmatpush.msrb.mxu1 %v1252_v20 }
 0x292   : > { %736 = vmatpush.msrb.mxu0 %v1243_v8 }
 0x293   : > { %756 = vmatpush.msrb.mxu1 %v1246_v9  ;;  %898 = vmatmul.msk.f32.vlgmr.msrb.gmra.mxu0 %vm717_vm12, %v700_v60 }
 0x294   : > { %899 = vmatmul.msk.f32.vlgmr.msrb.gmra.mxu1 %vm717_vm12, %v700_v60 }
 0x310   : > { %v738_v62 = vpop.f32.mrf.mxu0 }
 0x311   : > { %v758_v63 = vpop.f32.mrf.mxu1  ;;  %v739_v0 = vadd.f32 %v738_v62, %v715_v61 }
 0x312   : > { %v759_v1 = vadd.f32 %v758_v63, %v715_v61 }
 0x313   : > { %v761_v4 = vmul.f32 0.2, %v739_v0 }
 0x314   : > { %v762_v3 = vmul.f32 0.2, %v759_v1 }
 0x315   : > { %v768_v8 = vadd.f32 %v764_v5, %v761_v4 }
 0x316   : > { %v769_v6 = vadd.f32 %v765_v2, %v762_v3 }
 0x318   : > { %v772_v7 = vrot.slane %v769_v6, 4 }
 0x31a   : > { %v774_v9 = vsel %vm773_vm13, %v768_v8, %v772_v7 }
 0x31b   : > { %776 = vst [vmem:[%s422_s14] sm:$0xff] %v774_v9 }
 0x31c   : > { %1031 = shalt.err (!%p1028_p13)
}
 0x31d   : > { %909 = dma.vmem_to_hbm [thread:$0]  (%p1201_p9), %s794_s16, 128, %s796_s23, %s778_s20  }
 0x31e PF: > { %s1357_s26 = sld [smem:[#allocation9_spill]]  ;;  %p916_p0 = pnand %p883_p12, %p1208_p11 }
 0x320   : > { %p917_p1 = pneg %p916_p0 }
 0x324   : > { %s807_s14 = sand.u32 1, %s1357_s26  }
 0x325   : > { %s808_s17 = scalar_lea.sflag [#allocation5], %s807_s14 }
 0x326   : > { %1061 = dma.done.wait (%p917_p1), %s808_s17, 128  }
 0x327   : > { %1063 = vsyncadd (%p917_p1), %s808_s17, 4294967168  ;;  %s27_s22 = sadd.s32 1, %s1086_s22   ;;  %s1358_s30 = sld [smem:[#allocation10_spill]] }
 0x328   : > { %p24_p2 = scmp.ge.s32.totalorder %s27_s22, 4   ;;  %s1359_s17 = smov %s1070_s18 }
 0x329   : > { %s1360_s18 = smov %s1074_s19  ;;  %s1361_s19 = smov %s1206_s12 }
 0x32a   : > { %s1362_s20 = smov %s1082_s21  ;;  %26 = sbr.rel (!%p24_p2) target bundleno = 8 (0x8), region = 109 }
 0x32d   : > { %s1363_s21 = smov %s1358_s30 }
 0x32f   :  { %814 = vsyncpa [#allocation4], 1 }
 0x330   :  { %816 = vsyncpa [#allocation4 + $0x1], 1 }
 0x331   :  { %817 = vsyncpa [#allocation5], 1 }
 0x332   :  { %819 = vsyncpa [#allocation5 + $0x1], 1 }

</bundles_post_ra>
